<compile_context>
chip_gen: v5e
topology: v5e:2x2
jax: 0.10.0
libtpu: 0.0.40
codegen_flags: <defaults>
</compile_context>

<pallas_src>
import functools

import jax
import jax.numpy as jnp
from jax import lax
from jax.experimental import pallas as pl
from jax.experimental.pallas import tpu as pltpu

LANES = 128
FQ_BLOCK_ROWS = 2048     # 2048x128 f32 = 1 MiB per buffer (in+out dbl-buffered ~4 MiB)
STATS_BLOCK_ROWS = 2048
INIT_BLOCK_ROWS = 2048   # x tile reused 80x; big tile amortizes mask/iota + step cost
NUM_SPLITS = 2           # leading 'parallel' axis -> dual-TC split on v7x megacore


def _round_up(v, m):
    return ((v + m - 1) // m) * m


def _to_lane_tiles(x_flat):
    """Flatten -> (rows, 128), padding only the ragged tail (<128 elems)."""
    n = int(x_flat.shape[0])
    rem = (-n) % LANES
    if rem:
        x_flat = jnp.pad(x_flat, (0, rem))
    rows = (n + rem) // LANES
    return x_flat.reshape(rows, LANES), n, rem


# ----------------------------------------------------------------------------
# Kernel 1: elementwise fake quantization
#   x_q = round(clip((x - beta)/scale, neg_thd, pos_thd)) * scale + beta
# ----------------------------------------------------------------------------
def _fake_quant_kernel(pos_thd, neg_thd, sym_mode, sb_ref, x_ref, o_ref):
    scale = sb_ref[0]
    inv_scale = 1.0 / scale                       # one scalar recip per block
    x = x_ref[...].astype(jnp.float32)
    if sym_mode:                                  # beta == 0: skip -beta / +beta
        xs = jnp.clip(x * inv_scale, neg_thd, pos_thd)
        o_ref[...] = (jnp.round(xs) * scale).astype(o_ref.dtype)
    else:
        beta = sb_ref[1]
        xs = jnp.clip((x - beta) * inv_scale, neg_thd, pos_thd)
        o_ref[...] = (jnp.round(xs) * scale + beta).astype(o_ref.dtype)


def pallas_fake_quant(x, scale, beta, pos_thd, neg_thd, symmetric):
    orig_shape = x.shape
    orig_dtype = x.dtype
    x2, n, rem = _to_lane_tiles(x.reshape(-1))    # native dtype through DMA
    rows = x2.shape[0]
    tr = FQ_BLOCK_ROWS if rows >= FQ_BLOCK_ROWS else rows
    grid = (pl.cdiv(rows, tr),)

    sb = jnp.stack([jnp.asarray(scale, jnp.float32),
                    jnp.asarray(beta, jnp.float32)])
    kern = functools.partial(_fake_quant_kernel, float(pos_thd), float(neg_thd),
                             bool(symmetric))
    out = pl.pallas_call(
        kern,
        out_shape=jax.ShapeDtypeStruct((rows, LANES), orig_dtype),
        grid=grid,
        in_specs=[
            pl.BlockSpec(memory_space=pltpu.MemorySpace.SMEM),   # (scale, beta)
            pl.BlockSpec((tr, LANES), lambda i: (i, 0)),         # x tile
        ],
        out_specs=pl.BlockSpec((tr, LANES), lambda i: (i, 0)),
        compiler_params=pltpu.CompilerParams(
            dimension_semantics=("parallel",)),                  # megacore on v7x
    )(sb, x2)
    out = out.reshape(-1)
    if rem:
        out = out[:n]
    return out.reshape(orig_shape)


# ----------------------------------------------------------------------------
# Kernel 2: single-pass (max, min) stats (fused pre-pass for the init search)
# ----------------------------------------------------------------------------
def _minmax_kernel(n_valid, x_ref, out_ref):
    t = pl.program_id(0)
    x = x_ref[...].astype(jnp.float32)
    tr, lanes = x.shape
    row_ids = lax.broadcasted_iota(jnp.int32, (tr, lanes), 0)
    lane_ids = lax.broadcasted_iota(jnp.int32, (tr, lanes), 1)
    gidx = (t * tr + row_ids) * lanes + lane_ids
    valid = gidx < n_valid
    tile_max = jnp.max(jnp.where(valid, x, jnp.float32(-3.0e38)))
    tile_min = jnp.min(jnp.where(valid, x, jnp.float32(3.0e38)))

    @pl.when(t == 0)
    def _():
        out_ref[0] = tile_max
        out_ref[1] = tile_min

    @pl.when(t != 0)
    def _():
        out_ref[0] = jnp.maximum(out_ref[0], tile_max)
        out_ref[1] = jnp.minimum(out_ref[1], tile_min)


def pallas_minmax(x2, n_valid):
    rows = x2.shape[0]
    tr = STATS_BLOCK_ROWS if rows >= STATS_BLOCK_ROWS else rows
    grid = (pl.cdiv(rows, tr),)
    kern = functools.partial(_minmax_kernel, n_valid)
    return pl.pallas_call(
        kern,
        out_shape=jax.ShapeDtypeStruct((2,), jnp.float32),
        grid=grid,
        in_specs=[pl.BlockSpec((tr, LANES), lambda i: (i, 0))],
        out_specs=pl.BlockSpec(memory_space=pltpu.MemorySpace.SMEM),
        compiler_params=pltpu.CompilerParams(
            dimension_semantics=("arbitrary",)),
    )(x2)


# ----------------------------------------------------------------------------
# Kernel 3: 80-candidate LSQ init search.  Each row-tile is DMA'd once; for
# every candidate scale the kernel accumulates sum(|xs - round(clip(xs))|^2.4)
# into lane i of an (8,128) register-carried accumulator (fori_loop unroll=4),
# then adds it to the per-split loss block once.  The s^2.4 weighting, the
# cross-split merge, the argmin and (scale, beta) reconstruction live in a
# tiny JAX epilogue.
# ----------------------------------------------------------------------------
def _init_search_kernel(pos_thd, neg_thd, all_positive, sym_mode, n_valid,
                        tiles_per_split, stats_ref, x_ref, loss_ref):
    c = pl.program_id(0)          # split (TensorCore) index
    t = pl.program_id(1)          # row-tile within split
    thd_range = pos_thd - neg_thd

    x = x_ref[...].astype(jnp.float32)
    tr, lanes = x.shape

    # In-kernel validity mask, computed once per tile (also masks the padded /
    # partially-OOB tail rows).
    row_ids = lax.broadcasted_iota(jnp.int32, (tr, lanes), 0)
    lane_ids = lax.broadcasted_iota(jnp.int32, (tr, lanes), 1)
    tile_idx = c * tiles_per_split + t
    gidx = (tile_idx * tr + row_ids) * lanes + lane_ids
    valid = gidx < n_valid

    cand_lane = lax.broadcasted_iota(jnp.int32, (8, 128), 1)

    s0 = stats_ref[0]     # sym: abs-max   | asym: max
    s1 = stats_ref[1]     # sym: unused(0) | asym: min

    def body(i, acc):
        f = 1.0 - i.astype(jnp.float32) * 0.01
        if sym_mode:
            new_max = s0 * f
            s = (new_max if all_positive else 2.0 * new_max) / thd_range
            inv = 1.0 / s                         # scalar recip, vector mul below
            xs = x * inv                          # beta == 0
        else:
            new_max = s0 * f
            new_min = s1 * f
            s = (new_max - new_min) / thd_range
            b = new_min - s * neg_thd
            inv = 1.0 / s
            xs = (x - b) * inv
        xr = jnp.round(jnp.clip(xs, neg_thd, pos_thd))
        # |x - xq| = s * |xs - xr|; the s^2.4 factor is applied per-candidate
        # in the JAX epilogue, so only |d|^2.4 is accumulated here.
        d = jnp.where(valid, jnp.abs(xs - xr), 0.0)
        # d^2.4 via exp/log on the EUP; log(0) -> -inf -> exp -> 0, no NaN.
        partial = jnp.sum(jnp.exp(2.4 * jnp.log(d)))
        return acc + jnp.where(cand_lane == i, partial, 0.0)

    acc = lax.fori_loop(0, 80, body, jnp.zeros((8, 128), jnp.float32),
                        unroll=4)

    @pl.when(t == 0)
    def _():
        loss_ref[...] = jnp.zeros_like(loss_ref)

    loss_ref[...] = loss_ref[...] + acc[None, :, :]   # one RMW per tile


def pallas_lsq_init(x, pos_thd, neg_thd, all_positive, symmetric):
    x2, n, _ = _to_lane_tiles(x.reshape(-1))      # native dtype; cast in-kernel
    rows = x2.shape[0]

    # Row split across NUM_SPLITS (dual-TC on v7x); pad rows so every block of
    # the (NUM_SPLITS, tiles_per_split) grid is fully in-bounds.
    per_split = _round_up(pl.cdiv(rows, NUM_SPLITS), 8)
    tr = min(INIT_BLOCK_ROWS, per_split)
    tiles_per_split = pl.cdiv(rows, NUM_SPLITS * tr)
    rows_padded = NUM_SPLITS * tiles_per_split * tr
    if rows_padded > rows:
        x2 = jnp.pad(x2, ((0, rows_padded - rows), (0, 0)))

    # Fused single-pass (max, min) stats; abs-max derived for the sym path.
    mxmn = pallas_minmax(x2, n)
    if symmetric:
        stats = jnp.stack([jnp.maximum(mxmn[0], -mxmn[1]), jnp.float32(0.0)])
    else:
        stats = mxmn

    n_elems = rows_padded * LANES
    kern = functools.partial(_init_search_kernel, float(pos_thd),
                             float(neg_thd), bool(all_positive),
                             bool(symmetric), n, tiles_per_split)
    loss_out = pl.pallas_call(
        kern,
        out_shape=jax.ShapeDtypeStruct((NUM_SPLITS, 8, LANES), jnp.float32),
        grid=(NUM_SPLITS, tiles_per_split),
        in_specs=[
            pl.BlockSpec(memory_space=pltpu.MemorySpace.SMEM),    # stats
            pl.BlockSpec((tr, LANES),
                         lambda c, t: (c * tiles_per_split + t, 0)),
        ],
        out_specs=pl.BlockSpec((1, 8, LANES), lambda c, t: (c, 0, 0)),
        compiler_params=pltpu.CompilerParams(
            dimension_semantics=("parallel", "arbitrary")),
        cost_estimate=pl.CostEstimate(
            flops=80 * 9 * n_elems,
            transcendentals=80 * 2 * n_elems,
            bytes_accessed=4 * n_elems),
    )(stats, x2)

    # ----- tiny JAX epilogue: merge splits, weight by s^2.4, argmin, rebuild -----
    thd_range = float(pos_thd - neg_thd)
    f = 1.0 - jnp.arange(80, dtype=jnp.float32) * 0.01
    if symmetric:
        new_max = stats[0] * f
        s_vec = (new_max if all_positive else 2.0 * new_max) / thd_range
    else:
        s_vec = (stats[0] * f - stats[1] * f) / thd_range

    raw = jnp.sum(loss_out[:, 0, :], axis=0)[:80]   # sum(|d|^2.4) per candidate
    losses = raw * (s_vec ** 2.4)                   # |x-xq|^2.4 = s^2.4 * |d|^2.4
    big = jnp.float32(3.0e38)
    losses = jnp.where(jnp.isnan(losses), big, losses)
    idx = jnp.argmin(losses)                        # first min == strict '<' update
    # reference initial best_score = 100000 is vs the MEAN; sums compared here
    found = losses[idx] < jnp.float32(100000.0) * n

    s_sel = s_vec[idx]
    if symmetric:
        b_sel = jnp.float32(0.0)
    elif all_positive:
        b_sel = jnp.float32(-1e-9)                  # recorded beta override
    else:
        b_sel = stats[1] * f[idx] - s_sel * neg_thd
    scale = jnp.where(found, s_sel, jnp.float32(1.0))
    beta = jnp.where(found, b_sel, jnp.float32(0.0))
    return scale, beta                              # device scalars (no host sync)


# ----------------------------------------------------------------------------
# LSQQuantizer (JAX/Pallas port of module/base_lsq.py)
# ----------------------------------------------------------------------------
class LSQQuantizerPallas:
    def __init__(self, n_bits: int = 8, symmetric: bool = False,
                 channel_wise: bool = False, scale_method: str = 'max',
                 leaf_param: bool = False):
        self.sym = symmetric
        self.channel_wise = channel_wise
        self.scale_method = scale_method
        self.n_bits = n_bits
        self.pos_thd = None
        self.neg_thd = None
        self.leaf_param = leaf_param
        self.init_number = 1
        self.init_state = 0
        self.all_positive = False

    # --- config, identical to the PyTorch module ---
    def set_quantization_bit(self, bit: int):
        self.n_bits = bit
        if self.all_positive:
            self.pos_thd = 2 ** self.n_bits - 1
            self.neg_thd = 0
        else:
            self.pos_thd = 2 ** (self.n_bits - 1) - 1
            self.neg_thd = -2 ** (self.n_bits - 1)

    def set_quantization_params(self, bit=8, symmetric=False, channel_wise=False):
        self.sym = symmetric
        self.channel_wise = channel_wise
        self.set_quantization_bit(bit)

    # --- forward: the reference forward() returns None (no compute) ---
    def forward(self, x):
        # TODO(synk): reference LSQQuantizer.forward is an empty stub; nothing to compute.
        return None

    __call__ = forward

    # --- quantization hot paths (Pallas kernels); values stay on device ---
    def sym_quantize(self, x, mx, mn):
        scale = (jnp.asarray(mx, jnp.float32) - jnp.asarray(mn, jnp.float32)) \
            / (self.pos_thd - self.neg_thd)
        return pallas_fake_quant(x, scale, jnp.float32(0.0),
                                 self.pos_thd, self.neg_thd, symmetric=True)

    def asym_quantize(self, x, mx, mn):
        scale = (jnp.asarray(mx, jnp.float32) - jnp.asarray(mn, jnp.float32)) \
            / (self.pos_thd - self.neg_thd)
        beta = jnp.asarray(mn, jnp.float32) - scale * self.neg_thd
        return pallas_fake_quant(x, scale, beta, self.pos_thd, self.neg_thd,
                                 symmetric=False)

    def symmetric_init(self, x, bit):
        self.set_quantization_bit(bit)
        return pallas_lsq_init(x, self.pos_thd, self.neg_thd,
                               self.all_positive, symmetric=True)

    def asymmetric_init(self, x, bit):
        self.set_quantization_bit(bit)
        return pallas_lsq_init(x, self.pos_thd, self.neg_thd,
                               self.all_positive, symmetric=False)


if __name__ == "__main__":
    key = jax.random.PRNGKey(0)
    # layout: NCHW input (batch=2, channels=4, H=W=16), same as the PyTorch module.
    x = jax.random.normal(key, (2, 4, 16, 16), dtype=jnp.float32)

    q = LSQQuantizerPallas(n_bits=8, symmetric=False, channel_wise=False)
    q.set_quantization_params(bit=8, symmetric=False, channel_wise=False)

    # 80-candidate init searches (each call runs only its own search)
    asym_scale, asym_beta = q.asymmetric_init(x, bit=8)
    sym_scale, sym_beta = q.symmetric_init(x, bit=8)

    # fake-quantize with device-resident ranges (no float() host syncs)
    x_max = jnp.max(x)
    x_min = jnp.min(x)
    x_absmax = jnp.max(jnp.abs(x))
    xq_asym = q.asym_quantize(x, x_max, x_min)
    xq_sym = q.sym_quantize(x, x_absmax, -x_absmax)

    jax.block_until_ready((xq_asym, xq_sym, asym_scale, asym_beta,
                           sym_scale, sym_beta))

    # forward() itself is a no-op, matching the reference module
    assert q.forward(x) is None

    print("KERNEL_OK")
</pallas_src>

<mosaic_0001>
module attributes {stable_mosaic.version = 11 : i64} {
  func.func @_minmax_kernel(%arg0: i32, %arg1: memref<16x128xf32, #tpu.memory_space<vmem>>, %arg2: memref<2xf32, #tpu.memory_space<smem>>) attributes {dimension_semantics = [#tpu.dimension_semantics<arbitrary>], iteration_bounds = array<i64: 1>, scalar_prefetch = 0 : i64, scratch_operands = 0 : i64, tpu.core_type = #tpu.core_type<tc>, window_params = [{transform_indices = @transform_0, window_bounds = array<i64: 16, 128>}, {transform_indices = @transform_1, window_bounds = array<i64: 2>}]} {
    %c0 = arith.constant 0 : index
    %c0_0 = arith.constant 0 : index
    %0 = vector.load %arg1[%c0, %c0_0] : memref<16x128xf32, #tpu.memory_space<vmem>>, vector<16x128xf32>
    %1 = tpu.iota {dimensions = array<i32: 0>} : vector<16x128xi32>
    %2 = tpu.iota {dimensions = array<i32: 1>} : vector<16x128xi32>
    %c16_i32 = arith.constant 16 : i32
    %3 = arith.muli %arg0, %c16_i32 : i32
    %4 = vector.broadcast %3 : i32 to vector<16x128xi32>
    %5 = arith.addi %4, %1 : vector<16x128xi32>
    %c128_i32 = arith.constant 128 : i32
    %6 = vector.broadcast %c128_i32 : i32 to vector<16x128xi32>
    %7 = arith.muli %5, %6 : vector<16x128xi32>
    %8 = arith.addi %7, %2 : vector<16x128xi32>
    %c2048_i32 = arith.constant 2048 : i32
    %9 = vector.broadcast %c2048_i32 : i32 to vector<16x128xi32>
    %10 = arith.cmpi slt, %8, %9 : vector<16x128xi32>
    %cst = arith.constant -3.000000e+38 : f32
    %11 = vector.broadcast %cst : f32 to vector<16x128xf32>
    %12 = arith.select %10, %0, %11 : vector<16x128xi1>, vector<16x128xf32>
    %13 = vector.shape_cast %12 : vector<16x128xf32> to vector<1x16x128xf32>
    %cst_1 = arith.constant dense<0xFF800000> : vector<1xf32>
    %14 = vector.multi_reduction <maximumf>, %13, %cst_1 [1, 2] : vector<1x16x128xf32> to vector<1xf32>
    %15 = vector.shape_cast %14 : vector<1xf32> to vector<1x1x1xf32>
    %16 = vector.extract %15[0, 0, 0] : f32 from vector<1x1x1xf32>
    %cst_2 = arith.constant 3.000000e+38 : f32
    %17 = vector.broadcast %cst_2 : f32 to vector<16x128xf32>
    %18 = arith.select %10, %0, %17 : vector<16x128xi1>, vector<16x128xf32>
    %19 = vector.shape_cast %18 : vector<16x128xf32> to vector<1x16x128xf32>
    %cst_3 = arith.constant dense<0x7F800000> : vector<1xf32>
    %20 = vector.multi_reduction <minimumf>, %19, %cst_3 [1, 2] : vector<1x16x128xf32> to vector<1xf32>
    %21 = vector.shape_cast %20 : vector<1xf32> to vector<1x1x1xf32>
    %22 = vector.extract %21[0, 0, 0] : f32 from vector<1x1x1xf32>
    %c0_i32 = arith.constant 0 : i32
    %23 = arith.cmpi eq, %arg0, %c0_i32 : i32
    %24 = arith.extui %23 : i1 to i32
    %c0_i32_4 = arith.constant 0 : i32
    %25 = arith.cmpi ne, %24, %c0_i32_4 : i32
    scf.if %25 {
      %c0_7 = arith.constant 0 : index
      %29 = memref.load %arg2[%c0_7] : memref<2xf32, #tpu.memory_space<smem>>
      memref.store %16, %arg2[%c0_7] : memref<2xf32, #tpu.memory_space<smem>>
      %c1 = arith.constant 1 : index
      %30 = memref.load %arg2[%c1] : memref<2xf32, #tpu.memory_space<smem>>
      memref.store %22, %arg2[%c1] : memref<2xf32, #tpu.memory_space<smem>>
    } else {
    }
    %c0_i32_5 = arith.constant 0 : i32
    %26 = arith.cmpi ne, %arg0, %c0_i32_5 : i32
    %27 = arith.extui %26 : i1 to i32
    %c0_i32_6 = arith.constant 0 : i32
    %28 = arith.cmpi ne, %27, %c0_i32_6 : i32
    scf.if %28 {
      %c0_7 = arith.constant 0 : index
      %29 = memref.load %arg2[%c0_7] : memref<2xf32, #tpu.memory_space<smem>>
      %30 = arith.maximumf %29, %16 : f32
      %c0_8 = arith.constant 0 : index
      %31 = memref.load %arg2[%c0_8] : memref<2xf32, #tpu.memory_space<smem>>
      memref.store %30, %arg2[%c0_8] : memref<2xf32, #tpu.memory_space<smem>>
      %c1 = arith.constant 1 : index
      %32 = memref.load %arg2[%c1] : memref<2xf32, #tpu.memory_space<smem>>
      %33 = arith.minimumf %32, %22 : f32
      %c1_9 = arith.constant 1 : index
      %34 = memref.load %arg2[%c1_9] : memref<2xf32, #tpu.memory_space<smem>>
      memref.store %33, %arg2[%c1_9] : memref<2xf32, #tpu.memory_space<smem>>
    } else {
    }
    return
  }
  func.func @transform_0(%arg0: i32) -> (i32, i32) {
    %c0_i32 = arith.constant 0 : i32
    %c0_i32_0 = arith.constant 0 : i32
    return %arg0, %c0_i32 : i32, i32
  }
  func.func @transform_1(%arg0: i32) -> i32 {
    %c0_i32 = arith.constant 0 : i32
    %c0_i32_0 = arith.constant 0 : i32
    return %c0_i32 : i32
  }
}

</mosaic_0001>

<bundles_post_ra>
// kernel: tpu_custom_call.1
= control target key start
LH: loop header
LB: loop body
LE: loop exit
PB: predicated region body
PF: predicated region fallthrough
CT: control target
= control target key end

     0   :  { %6 = vsyncpa [#allocation3], 0  ;;  %s171_s0 = inlined_call_operand.hbm [shape: f32[16,128], index: 0, kind: input, shape index: {}]   ;;  %s172_s1 = inlined_call_operand.hbm [shape: f32[2], index: 1, kind: output, shape index: {}]  }
   0x1   :  { %7 = vsyncpa [#allocation4], 0  ;;  %s12_s8 = sshll.u32 %s171_s0, 4  ;;  %s151_s9 = smov [#allocation2]   ;;  %s13_s8 = int_to_ptr.hbm [resolvable:$true] %s12_s8 }
   0x2   :  { %s14_s10 = sshll.u32 %s151_s9, 4  ;;  %s152_s11 = smov 128   ;;  %s15_s10 = int_to_ptr.vmem [resolvable:$true] %s14_s10 }
   0x3   :  { %s153_s12 = smov 8  }
   0x4   :  { %20 = dma.hbm_to_vmem [thread:$0]  %s13_s8, 256, %s15_s10, [#allocation3], %s152_s11, %s152_s11, %s153_s12  }
   0x5   :  { %147 = dma.done.wait [#allocation3], 256  }
   0x6   :  { %148 = vsyncadd [#allocation3], 4294967040  ;;  %v27_v0 = vlaneseq  ;;  %v25_v7 = vld [vmem:[#allocation2] sm:$0xff]  ;;  %v26_v8 = vld [vmem:[#allocation2 + $0x8] sm:$0xff]  ;;  %s91_s15 = sshll.u32 %s172_s1, 4  ;;  %s154_s17 = smov [#allocation5]   ;;  %s92_s15 = int_to_ptr.hbm [resolvable:$true] %s91_s15 }
   0x8   :  { %v28_v1 = vshrl.u32 %v27_v0, 7  ;;  %v31_v2 = vand.u32 127, %v27_v0 }
   0xa   :  { %v29_v3 = vadd.s32 8, %v28_v1  ;;  %v36_v4 = vmul.u32 128, %v28_v1 }
   0xc   :  { %v37_v5 = vmul.u32 128, %v29_v3  ;;  %v38_v6 = vadd.s32 %v36_v4, %v31_v2 }
   0xe   :  { %v39_v9 = vadd.s32 %v37_v5, %v31_v2  ;;  %vm40_vm0 = vcmp.lt.s32.totalorder %v38_v6, 2048 }
   0xf   :  { %v42_v10 = vsel %vm40_vm0, %v25_v7, -3e+38  ;;  %v54_v13 = vsel %vm40_vm0, %v25_v7, 3e+38 }
  0x10   :  { %vm41_vm1 = vcmp.lt.s32.totalorder %v39_v9, 2048 }
  0x11   :  { %v43_v11 = vsel %vm41_vm1, %v26_v8, -3e+38  ;;  %v55_v14 = vsel %vm41_vm1, %v26_v8, 3e+38 }
  0x12   :  { %v44_v12 = vmax.f32 %v42_v10, %v43_v11  ;;  %v56_v15 = vmin.f32 %v54_v13, %v55_v14 }
  0x14   :  { %45 = vmax.xlane.f32.xlu0 %v44_v12 }
  0x1c   :  { %57 = vmin.xlane.f32.xlu0 %v56_v15 }
  0x87   :  { %v46_v16 = vpop.xlane.xlu0 %45 }
  0x88   :  { %v47_v17 = vrot.slane %v46_v16, 4 }
  0x8a   :  { %v48_v18 = vmax.f32 %v46_v16, %v47_v17 }
  0x8c   :  { %v49_v19 = vrot.slane %v48_v18, 2 }
  0x8e   :  { %v50_v20 = vmax.f32 %v48_v18, %v49_v19 }
  0x8f   :  { %v58_v21 = vpop.xlane.xlu0 %57 }
  0x90   :  { %v59_v22 = vrot.slane %v58_v21, 4  ;;  %v51_v23 = vrot.slane %v50_v20, 1 }
  0x92   :  { %v60_v24 = vmin.f32 %v58_v21, %v59_v22  ;;  %v52_v25 = vmax.f32 %v50_v20, %v51_v23 }
  0x94   :  { %v61_v26 = vrot.slane %v60_v24, 2  ;;  %103 = vpush %v52_v25 }
  0x96   :  { %v62_v27 = vmin.f32 %v60_v24, %v61_v26 }
  0x98   :  { %v63_v28 = vrot.slane %v62_v27, 1 }
  0x9a   :  { %v64_v29 = vmin.f32 %v62_v27, %v63_v28 }
  0x9c   :  { %105 = vpush %v64_v29 }
  0xc5   :  { %s104_s0 = spop %103 }
  0xc6   :  { %71 = sst [smem:[#allocation5]] %s104_s0 }
  0xcd   :  { %s106_s16 = spop %105 }
  0xce   :  { %73 = sst [smem:[#allocation5 + $0x1]] %s106_s16 }
  0xcf   :  { %94 = dma.smem_to_hbm %s154_s17, 16, %s92_s15, [#allocation4]  }
  0xd0   :  { %149 = dma.done.wait [#allocation4], 16  }
  0xd1   :  { %150 = vsyncadd [#allocation4], 4294967280 }
  0xd2   :  { %99 = sfence }
  0xd3   :  { %100 = vsyncpa [#allocation3], 1 }
  0xd4   :  { %101 = vsyncpa [#allocation4], 1 }

</bundles_post_ra>
